<compile_context>
chip_gen: v5e
topology: v5e:2x2
jax: 0.10.0
libtpu: 0.0.40
codegen_flags: <defaults>
</compile_context>

<pallas_src>
import math

import jax
import jax.numpy as jnp
from jax.experimental import pallas as pl
from jax.experimental.pallas import tpu as pltpu


def _softplus(z):
    # Numerically stable softplus: max(z, 0) + log1p(exp(-|z|))
    return jnp.maximum(z, 0.0) + jnp.log1p(jnp.exp(-jnp.abs(z)))


def prior_discriminator_kernel(xp_ref, w0_ref, b0_ref, w1_ref, b1_ref,
                               w2t_ref, b2_ref, out_ref):
    xp = xp_ref[...]                                             # (2B, dfac)

    # Layer 0 + ReLU (MXU)
    h = jnp.dot(xp, w0_ref[...], preferred_element_type=jnp.float32) + b0_ref[...]
    h = jnp.maximum(h, 0.0)

    # Layer 1 + ReLU (MXU)
    h = jnp.dot(h, w1_ref[...], preferred_element_type=jnp.float32) + b1_ref[...]
    h = jnp.maximum(h, 0.0)

    # Layer 2 (out_features == 1): VPU multiply + lane reduction instead of a
    # lane-sparse MXU matmul.  w2t is (1, H), broadcasts over rows.
    logits = jnp.sum(h * w2t_ref[...], axis=-1, keepdims=True) + b2_ref[0]  # (2B, 1)

    two_b = logits.shape[0]
    b = two_b // 2
    z_prior = logits[:b]        # rows that saw the uniform prior sample
    z_x = logits[b:]            # rows that saw the data x

    # loss = -( mean(log sigmoid(z_prior)) + mean(log(1 - sigmoid(z_x))) )
    #      =    mean(softplus(-z_prior))   + mean(softplus(z_x))
    loss = (jnp.sum(_softplus(-z_prior)) + jnp.sum(_softplus(z_x))) / float(b)

    out_ref[0] = loss


def prior_discriminator_forward(x, prior, params):
    w0, b0, w1, b1, w2, b2 = params

    # Fuse the two discriminator passes: one (2B, dfac) operand, prior first.
    xp = jnp.concatenate([prior, x], axis=0).astype(jnp.float32)
    w2t = w2.reshape(1, -1).astype(jnp.float32)    # (1, H)  for the VPU last layer
    b2s = b2.reshape(-1).astype(jnp.float32)       # (1,)    SMEM scalar

    vmem = pl.BlockSpec(memory_space=pltpu.MemorySpace.VMEM)
    smem = pl.BlockSpec(memory_space=pltpu.MemorySpace.SMEM)

    out = pl.pallas_call(
        prior_discriminator_kernel,
        out_shape=jax.ShapeDtypeStruct((1,), jnp.float32),
        in_specs=[vmem, vmem, vmem, vmem, vmem, vmem, smem],
        out_specs=smem,
    )(xp, w0, b0, w1, b1, w2t, b2s)
    return out[0]


def init_params(key, dfac, dis_hid):
    """Deterministic init mimicking nn.Linear default (uniform +-1/sqrt(fan_in))."""
    ks = jax.random.split(key, 6)

    def linear(kw, kb, fan_in, fan_out):
        bound = 1.0 / math.sqrt(fan_in)
        w = jax.random.uniform(kw, (fan_in, fan_out), jnp.float32, -bound, bound)
        b = jax.random.uniform(kb, (1, fan_out), jnp.float32, -bound, bound)
        return w, b

    w0, b0 = linear(ks[0], ks[1], dfac, dis_hid)
    w1, b1 = linear(ks[2], ks[3], dis_hid, dis_hid)
    w2, b2 = linear(ks[4], ks[5], dis_hid, 1)
    return (w0, b0, w1, b1, w2, b2)


def reference_forward(x, prior, params):
    """Pure-JAX reference matching the PyTorch module (sigmoid -> log -> mean)."""
    w0, b0, w1, b1, w2, b2 = params

    def disc(v):
        h = jnp.maximum(v @ w0 + b0, 0.0)
        h = jnp.maximum(h @ w1 + b1, 0.0)
        return jax.nn.sigmoid(h @ w2 + b2)

    term_a = jnp.mean(jnp.log(disc(prior)))
    term_b = jnp.mean(jnp.log(1.0 - disc(x)))
    return -(term_a + term_b)


if __name__ == "__main__":
    # Small shapes consistent with the module: batch=8, dfac=32, dis_hid=32
    B, DFAC, DIS_HID = 8, 32, 32

    key = jax.random.PRNGKey(0)
    k_params, k_x, k_prior = jax.random.split(key, 3)

    params = init_params(k_params, DFAC, DIS_HID)
    x = jax.random.normal(k_x, (B, DFAC), jnp.float32)
    # torch.rand_like(x): uniform [0, 1) -- drawn in glue code, consumed in-kernel.
    prior = jax.random.uniform(k_prior, (B, DFAC), jnp.float32)

    loss = prior_discriminator_forward(x, prior, params)
    loss = jax.block_until_ready(loss)

    ref = reference_forward(x, prior, params)
    assert jnp.allclose(loss, ref, rtol=1e-5, atol=1e-5), (loss, ref)

    print("KERNEL_OK")
</pallas_src>

<mosaic_0001>
module attributes {stable_mosaic.version = 11 : i64} {
  func.func @prior_discriminator_kernel(%arg0: memref<16x32xf32, #tpu.memory_space<vmem>>, %arg1: memref<32x32xf32, #tpu.memory_space<vmem>>, %arg2: memref<1x32xf32, #tpu.memory_space<vmem>>, %arg3: memref<32x32xf32, #tpu.memory_space<vmem>>, %arg4: memref<1x32xf32, #tpu.memory_space<vmem>>, %arg5: memref<1x32xf32, #tpu.memory_space<vmem>>, %arg6: memref<1xf32, #tpu.memory_space<smem>>, %arg7: memref<1xf32, #tpu.memory_space<smem>>) attributes {dimension_semantics = [], scalar_prefetch = 0 : i64, scratch_operands = 0 : i64, tpu.core_type = #tpu.core_type<tc>} {
    %c0 = arith.constant 0 : index
    %c0_0 = arith.constant 0 : index
    %0 = vector.load %arg0[%c0, %c0_0] : memref<16x32xf32, #tpu.memory_space<vmem>>, vector<16x32xf32>
    %c0_1 = arith.constant 0 : index
    %c0_2 = arith.constant 0 : index
    %1 = vector.load %arg1[%c0_1, %c0_2] : memref<32x32xf32, #tpu.memory_space<vmem>>, vector<32x32xf32>
    %cst = arith.constant dense<0.000000e+00> : vector<16x32xf32>
    %2 = tpu.matmul %0, %1, %cst {dimension_numbers = #tpu.dot_dimension_numbers<[1], [0], [0], [1], [0, 0, 1, 1], [], []>} : vector<16x32xf32>, vector<32x32xf32>, vector<16x32xf32> -> vector<16x32xf32>
    %c0_3 = arith.constant 0 : index
    %c0_4 = arith.constant 0 : index
    %3 = vector.load %arg2[%c0_3, %c0_4] : memref<1x32xf32, #tpu.memory_space<vmem>>, vector<1x32xf32>
    %4 = vector.broadcast %3 : vector<1x32xf32> to vector<16x32xf32>
    %5 = arith.addf %2, %4 : vector<16x32xf32>
    %cst_5 = arith.constant 0.000000e+00 : f32
    %6 = vector.broadcast %cst_5 : f32 to vector<16x32xf32>
    %7 = arith.maximumf %5, %6 : vector<16x32xf32>
    %c0_6 = arith.constant 0 : index
    %c0_7 = arith.constant 0 : index
    %8 = vector.load %arg3[%c0_6, %c0_7] : memref<32x32xf32, #tpu.memory_space<vmem>>, vector<32x32xf32>
    %cst_8 = arith.constant dense<0.000000e+00> : vector<16x32xf32>
    %9 = tpu.matmul %7, %8, %cst_8 {dimension_numbers = #tpu.dot_dimension_numbers<[1], [0], [0], [1], [0, 0, 1, 1], [], []>} : vector<16x32xf32>, vector<32x32xf32>, vector<16x32xf32> -> vector<16x32xf32>
    %c0_9 = arith.constant 0 : index
    %c0_10 = arith.constant 0 : index
    %10 = vector.load %arg4[%c0_9, %c0_10] : memref<1x32xf32, #tpu.memory_space<vmem>>, vector<1x32xf32>
    %11 = vector.broadcast %10 : vector<1x32xf32> to vector<16x32xf32>
    %12 = arith.addf %9, %11 : vector<16x32xf32>
    %cst_11 = arith.constant 0.000000e+00 : f32
    %13 = vector.broadcast %cst_11 : f32 to vector<16x32xf32>
    %14 = arith.maximumf %12, %13 : vector<16x32xf32>
    %c0_12 = arith.constant 0 : index
    %c0_13 = arith.constant 0 : index
    %15 = vector.load %arg5[%c0_12, %c0_13] : memref<1x32xf32, #tpu.memory_space<vmem>>, vector<1x32xf32>
    %16 = vector.broadcast %15 : vector<1x32xf32> to vector<16x32xf32>
    %17 = arith.mulf %14, %16 : vector<16x32xf32>
    %cst_14 = arith.constant dense<0.000000e+00> : vector<16xf32>
    %18 = vector.multi_reduction <add>, %17, %cst_14 [1] : vector<16x32xf32> to vector<16xf32>
    %19 = vector.shape_cast %18 : vector<16xf32> to vector<16x1xf32>
    %c0_15 = arith.constant 0 : index
    %20 = memref.load %arg6[%c0_15] : memref<1xf32, #tpu.memory_space<smem>>
    %21 = vector.broadcast %20 : f32 to vector<16x1xf32>
    %22 = arith.addf %19, %21 : vector<16x1xf32>
    %23 = vector.extract_strided_slice %22 {offsets = [0, 0], sizes = [8, 1], strides = [1, 1]} : vector<16x1xf32> to vector<8x1xf32>
    %24 = vector.extract_strided_slice %22 {offsets = [8, 0], sizes = [8, 1], strides = [1, 1]} : vector<16x1xf32> to vector<8x1xf32>
    %cst_16 = arith.constant 0.000000e+00 : f32
    %25 = vector.broadcast %cst_16 : f32 to vector<8x1xf32>
    %26 = arith.subf %25, %23 : vector<8x1xf32>
    %cst_17 = arith.constant 0.000000e+00 : f32
    %27 = vector.broadcast %cst_17 : f32 to vector<8x1xf32>
    %28 = arith.maximumf %26, %27 : vector<8x1xf32>
    %29 = math.absf %26 : vector<8x1xf32>
    %cst_18 = arith.constant 0.000000e+00 : f32
    %30 = vector.broadcast %cst_18 : f32 to vector<8x1xf32>
    %31 = arith.subf %30, %29 : vector<8x1xf32>
    %32 = math.exp %31 : vector<8x1xf32>
    %33 = math.log1p %32 : vector<8x1xf32>
    %34 = arith.addf %28, %33 : vector<8x1xf32>
    %35 = vector.shape_cast %34 : vector<8x1xf32> to vector<1x8x1xf32>
    %cst_19 = arith.constant dense<0.000000e+00> : vector<1xf32>
    %36 = vector.multi_reduction <add>, %35, %cst_19 [1, 2] : vector<1x8x1xf32> to vector<1xf32>
    %37 = vector.shape_cast %36 : vector<1xf32> to vector<1x1x1xf32>
    %38 = vector.extract %37[0, 0, 0] : f32 from vector<1x1x1xf32>
    %cst_20 = arith.constant 0.000000e+00 : f32
    %39 = vector.broadcast %cst_20 : f32 to vector<8x1xf32>
    %40 = arith.maximumf %24, %39 : vector<8x1xf32>
    %41 = math.absf %24 : vector<8x1xf32>
    %cst_21 = arith.constant 0.000000e+00 : f32
    %42 = vector.broadcast %cst_21 : f32 to vector<8x1xf32>
    %43 = arith.subf %42, %41 : vector<8x1xf32>
    %44 = math.exp %43 : vector<8x1xf32>
    %45 = math.log1p %44 : vector<8x1xf32>
    %46 = arith.addf %40, %45 : vector<8x1xf32>
    %47 = vector.shape_cast %46 : vector<8x1xf32> to vector<1x8x1xf32>
    %cst_22 = arith.constant dense<0.000000e+00> : vector<1xf32>
    %48 = vector.multi_reduction <add>, %47, %cst_22 [1, 2] : vector<1x8x1xf32> to vector<1xf32>
    %49 = vector.shape_cast %48 : vector<1xf32> to vector<1x1x1xf32>
    %50 = vector.extract %49[0, 0, 0] : f32 from vector<1x1x1xf32>
    %51 = arith.addf %38, %50 : f32
    %cst_23 = arith.constant 8.000000e+00 : f32
    %52 = arith.divf %51, %cst_23 : f32
    %c0_24 = arith.constant 0 : index
    %53 = memref.load %arg7[%c0_24] : memref<1xf32, #tpu.memory_space<smem>>
    memref.store %52, %arg7[%c0_24] : memref<1xf32, #tpu.memory_space<smem>>
    return
  }
}

</mosaic_0001>

<bundles_post_ra>
// kernel: tpu_custom_call.1
= control target key start
LH: loop header
LB: loop body
LE: loop exit
PB: predicated region body
PF: predicated region fallthrough
CT: control target
= control target key end

     0   :  { %13 = vsyncpa [#allocation4], 0  ;;  %s458_s0 = inlined_call_operand.hbm [shape: f32[16,32], index: 0, kind: input, shape index: {}]   ;;  %s459_s1 = inlined_call_operand.hbm [shape: f32[32,32], index: 1, kind: input, shape index: {}]   ;;  %s460_s2 = inlined_call_operand.vmem [shape: f32[1,32], index: 2, kind: input, shape index: {}]   ;;  %s461_s3 = inlined_call_operand.hbm [shape: f32[32,32], index: 3, kind: input, shape index: {}]   ;;  %s462_s4 = inlined_call_operand.vmem [shape: f32[1,32], index: 4, kind: input, shape index: {}]   ;;  %s463_s5 = inlined_call_operand.vmem [shape: f32[1,32], index: 5, kind: input, shape index: {}]   ;;  %s464_s6 = inlined_call_operand.<no memory space> [shape: f32[1], index: 6, kind: input, shape index: {}]   ;;  %s465_s7 = inlined_call_operand.hbm [shape: f32[1], index: 7, kind: output, shape index: {}]  }
   0x1   :  { %14 = vsyncpa [#allocation7], 0 }
   0x2   :  { %15 = vsyncpa [#allocation5], 0  ;;  %s33_s26 = sshll.u32 %s459_s1, 4  ;;  %s381_s27 = smov [#allocation6]   ;;  %s34_s26 = int_to_ptr.hbm [resolvable:$true] %s33_s26 }
   0x3   :  { %s35_s28 = sshll.u32 %s381_s27, 4  ;;  %s20_s8 = sshll.u32 %s458_s0, 4  ;;  %s36_s28 = int_to_ptr.vmem [resolvable:$true] %s35_s28  ;;  %s21_s8 = int_to_ptr.hbm [resolvable:$true] %s20_s8 }
   0x4   :  { %s382_s9 = smov 128   ;;  %s383_s10 = smov 8  }
   0x5   :  { %41 = dma.hbm_to_vmem [thread:$0]  %s34_s26, 512, %s36_s28, [#allocation7], %s382_s9, %s382_s9, %s383_s10  }
   0x6   :  { %s384_s11 = smov [#allocation3]   ;;  %s48_s15 = sshll.u32 %s461_s3, 4  ;;  %s49_s15 = int_to_ptr.hbm [resolvable:$true] %s48_s15 }
   0x7   :  { %s22_s12 = sshll.u32 %s384_s11, 4  ;;  %s385_s1 = smov [#allocation8]   ;;  %s23_s12 = int_to_ptr.vmem [resolvable:$true] %s22_s12 }
   0x8   :  { %28 = dma.hbm_to_vmem [thread:$0]  %s21_s8, 256, %s23_s12, [#allocation4], %s382_s9, %s382_s9, %s383_s10  }
   0x9   :  { %s50_s16 = sshll.u32 %s385_s1, 4  ;;  %s51_s16 = int_to_ptr.vmem [resolvable:$true] %s50_s16 }
   0xa   :  { %56 = dma.hbm_to_vmem [thread:$0]  %s49_s15, 512, %s51_s16, [#allocation7], %s382_s9, %s382_s9, %s383_s10  }
   0xb   :  { %375 = dma.done.wait [#allocation4], 256  }
   0xc   :  { %376 = vsyncadd [#allocation4], 4294967040 }
   0xd   :  { %377 = dma.done.wait [#allocation7], 1024  }
   0xe   :  { %378 = vsyncadd [#allocation7], 4294966272  ;;  %v80_v0 = vld [vmem:[#allocation6 + $0x18] sm:$0xff]  ;;  %v79_v1 = vld [vmem:[#allocation6 + $0x10] sm:$0xff]  ;;  %vm85_vm0 = vcmask 261120   ;;  %v169_v29 = vstv %s464_s6  ;;  %vm188_vm2 = vcmask 7168  }
   0xf   :  { %104 = vmatpush.msra.mxu0 %v80_v0  ;;  %257 = vmatpush.msra.mxu2 %v80_v0  ;;  %v78_v2 = vld [vmem:[#allocation6 + $0x8] sm:$0xff]  ;;  %v120_v3 = vld [vmem:[#allocation8 + $0x18] sm:$0xff]  ;;  %v77_v4 = vld [vmem:[#allocation6] sm:$0xff]  ;;  %s241_s22 = sshll.u32 %s465_s7, 4  ;;  %s387_s27 = smov [#allocation9]   ;;  %s242_s22 = int_to_ptr.hbm [resolvable:$true] %s241_s22 }
  0x10   :  { %143 = vmatpush.msra.mxu1 %v120_v3  ;;  %261 = vmatpush.msra.mxu3 %v120_v3  ;;  %v75_v5 = vld [vmem:[#allocation3] sm:$0xff]  ;;  %v76_v6 = vld [vmem:[#allocation3 + $0x8] sm:$0xff]  ;;  %v118_v8 = vld [vmem:[#allocation8 + $0x8] sm:$0xff] }
  0x11   :  { %105 = vmatpush.msra.mxu0 %v79_v1  ;;  %258 = vmatpush.msra.mxu2 %v79_v1  ;;  %v119_v7 = vld [vmem:[#allocation8 + $0x10] sm:$0xff]  ;;  %v117_v9 = vld [vmem:[#allocation8] sm:$0xff]  ;;  %v386_v1 = vmov 8.0  }
  0x12   :  { %144 = vmatpush.msra.mxu1 %v119_v7  ;;  %262 = vmatpush.msra.mxu3 %v119_v7  ;;  %v278_v10 = vld [vmem:[%s460_s2] ss:$0 sm:$0xff] }
  0x13   :  { %106 = vmatpush.msra.mxu0 %v78_v2  ;;  %259 = vmatpush.msra.mxu2 %v78_v2  ;;  %v279_v17 = vld [vmem:[%s462_s4] ss:$0 sm:$0xff] }
  0x14   :  { %145 = vmatpush.msra.mxu1 %v118_v8  ;;  %263 = vmatpush.msra.mxu3 %v118_v8  ;;  %v280_v20 = vld [vmem:[%s463_s5] ss:$0 sm:$0xff] }
  0x15   :  { %107 = vmatpush.msra.mxu0 %v77_v4  ;;  %260 = vmatpush.msra.mxu2 %v77_v4 }
  0x16   :  { %253 = vmatmul.msk.f32.vlgmr.msra.gmra.mxu0 %vm85_vm0, %v75_v5  ;;  %254 = vmatmul.msk.f32.vlgmr.msra.gmra.mxu2 %vm85_vm0, %v76_v6 }
  0x17   :  { %146 = vmatpush.msra.mxu1 %v117_v9  ;;  %264 = vmatpush.msra.mxu3 %v117_v9 }
  0x93   :  { %v109_v11 = vpop.f32.mrf.mxu0 }
  0x94   :  { %v110_v12 = vadd.f32 %v278_v10, %v109_v11 }
  0x96   :  { %v115_v13 = vmax.f32 %v110_v12, 0.0 }
  0x98   :  { %255 = vmatmul.msk.f32.vlgmr.msra.gmra.mxu1 %vm85_vm0, %v115_v13 }
  0x99   :  { %v112_v14 = vpop.f32.mrf.mxu2 }
  0x9a   :  { %v113_v15 = vadd.f32 %v278_v10, %v112_v14 }
  0x9c   :  { %v116_v16 = vmax.f32 %v113_v15, 0.0 }
  0x9e   :  { %256 = vmatmul.msk.f32.vlgmr.msra.gmra.mxu3 %vm85_vm0, %v116_v16 }
 0x115   :  { %v148_v18 = vpop.f32.mrf.mxu1 }
 0x116   :  { %v149_v19 = vadd.f32 %v279_v17, %v148_v18 }
 0x118   :  { %v154_v21 = vmax.f32 %v149_v19, 0.0 }
 0x11a   :  { %v160_v22 = vmul.f32 %v280_v20, %v154_v21 }
 0x11c   :  { %v162_v23 = vsel %vm85_vm0, %v160_v22, 0.0 }
 0x11d   :  { %163 = vadd.xlane.f32.xlu0 %v162_v23 }
 0x121   :  { %v151_v24 = vpop.f32.mrf.mxu3 }
 0x122   :  { %v152_v25 = vadd.f32 %v279_v17, %v151_v24 }
 0x124   :  { %v155_v26 = vmax.f32 %v152_v25, 0.0 }
 0x126   :  { %v161_v27 = vmul.f32 %v280_v20, %v155_v26 }
 0x128   :  { %v165_v28 = vsel %vm85_vm0, %v161_v27, 0.0 }
 0x129   :  { %166 = vadd.xlane.f32.xlu0 %v165_v28 }
 0x190   :  { %v164_v30 = vpop.xlane.xlu0 %163 }
 0x191   :  { %v170_v31 = vadd.f32 %v169_v29, %v164_v30 }
 0x193   :  { %v172_v32 = vsub.f32 0.0, %v170_v31 }
 0x195   :  { %v174_v33 = vand.u32 2147483647, %v172_v32  ;;  %v173_v50 = vmax.f32 %v172_v32, 0.0 }
 0x197   :  { %v175_v34 = vsub.f32 0.0, %v174_v33 }
 0x199   :  { %v176_v35 = vmul.f32 1.442695, %v175_v34 }
 0x19b   :  { %281 = vpow2.f32 %v176_v35 }
 0x19c   :  { %v167_v36 = vpop.xlane.xlu0 %166 }
 0x19d   :  { %v171_v37 = vadd.f32 %v169_v29, %v167_v36 }
 0x19f   :  { %v200_v38 = vand.u32 2147483647, %v171_v37  ;;  %v199_v61 = vmax.f32 %v171_v37, 0.0 }
 0x1a1   :  { %v282_v39 = vpop.eup %281  ;;  %v201_v40 = vsub.f32 0.0, %v200_v38 }
 0x1a2   :  { %v178_v41 = vadd.f32 1.0, %v282_v39  ;;  %v181_v43 = vmul.f32 -0.5, %v282_v39  ;;  %v184_v45 = vand.u32 2147483647, %v282_v39 }
 0x1a3   :  { %v202_v42 = vmul.f32 1.442695, %v201_v40 }
 0x1a4   :  { %283 = vlog2.f32 %v178_v41  ;;  %v182_v44 = vadd.f32 1.0, %v181_v43  ;;  %vm185_vm1 = vcmp.lt.f32.partialorder %v184_v45, 0.0004427343 }
 0x1a5   :  { %285 = vpow2.f32 %v202_v42 }
 0x1a6   :  { %v183_v49 = vmul.f32 %v282_v39, %v182_v44 }
 0x1aa   :  { %v284_v46 = vpop.eup %283 }
 0x1ab   :  { %v286_v47 = vpop.eup %285  ;;  %v180_v48 = vmul.f32 0.6931472, %v284_v46 }
 0x1ac   :  { %v204_v51 = vadd.f32 1.0, %v286_v47  ;;  %v207_v53 = vmul.f32 -0.5, %v286_v47  ;;  %v210_v57 = vand.u32 2147483647, %v286_v47 }
 0x1ad   :  { %v186_v52 = vsel %vm185_vm1, %v183_v49, %v180_v48 }
 0x1ae   :  { %v187_v54 = vadd.f32 %v186_v52, %v173_v50  ;;  %287 = vlog2.f32 %v204_v51  ;;  %v208_v56 = vadd.f32 1.0, %v207_v53  ;;  %vm211_vm3 = vcmp.lt.f32.partialorder %v210_v57, 0.0004427343 }
 0x1af   :  { %289 = vrcp.f32 %v386_v1 }
 0x1b0   :  { %v189_v55 = vsel %vm188_vm2, %v187_v54, 0.0  ;;  %v209_v60 = vmul.f32 %v286_v47, %v208_v56 }
 0x1b1   :  { %190 = vadd.xlane.f32.xlu1 %v189_v55 }
 0x1b4   :  { %v288_v58 = vpop.eup %287 }
 0x1b5   :  { %v206_v59 = vmul.f32 0.6931472, %v288_v58  ;;  %v290_v4 = vpop.eup %289 }
 0x1b6   :  { %v226_v7 = vmul.f32 8.0, %v290_v4  ;;  %vm230_vm4 = vweird.f32 %v290_v4 }
 0x1b7   :  { %v212_v62 = vsel %vm211_vm3, %v209_v60, %v206_v59 }
 0x1b8   :  { %v213_v63 = vadd.f32 %v212_v62, %v199_v61  ;;  %v227_v10 = vsub.f32 1.0, %v226_v7 }
 0x1ba   :  { %v214_v0 = vsel %vm188_vm2, %v213_v63, 0.0  ;;  %v228_v15 = vmul.f32 %v290_v4, %v227_v10 }
 0x1bb   :  { %215 = vadd.xlane.f32.xlu1 %v214_v0 }
 0x1bc   :  { %v229_v18 = vadd.f32 %v290_v4, %v228_v15 }
 0x1be   :  { %v231_v21 = vsel %vm230_vm4, %v290_v4, %v229_v18 }
 0x224   :  { %v191_v2 = vpop.xlane.xlu1 %190 }
 0x225   :  { %v192_v3 = vrot.slane %v191_v2, 4 }
 0x227   :  { %v193_v5 = vadd.f32 %v192_v3, %v191_v2 }
 0x229   :  { %v194_v6 = vrot.slane %v193_v5, 2 }
 0x22b   :  { %v195_v8 = vadd.f32 %v194_v6, %v193_v5 }
 0x22d   :  { %v196_v9 = vrot.slane %v195_v8, 1 }
 0x22e   :  { %v216_v11 = vpop.xlane.xlu1 %215 }
 0x22f   :  { %v217_v12 = vrot.slane %v216_v11, 4  ;;  %v197_v13 = vadd.f32 %v196_v9, %v195_v8 }
 0x231   :  { %v218_v14 = vadd.f32 %v217_v12, %v216_v11  ;;  %265 = vpush %v197_v13 }
 0x233   :  { %v219_v16 = vrot.slane %v218_v14, 2 }
 0x235   :  { %v220_v17 = vadd.f32 %v219_v16, %v218_v14 }
 0x237   :  { %v221_v19 = vrot.slane %v220_v17, 1 }
 0x239   :  { %v222_v20 = vadd.f32 %v221_v19, %v220_v17 }
 0x23b   :  { %267 = vpush %v222_v20 }
 0x23c   :  { %269 = vpush %v231_v21 }
 0x262   :  { %s266_s5 = spop %265 }
 0x26c   :  { %s268_s23 = spop %267 }
 0x26d   :  { %s224_s24 = sadd.f32 %s268_s23, %s266_s5  ;;  %s270_s25 = spop %269 }
 0x26f   :  { %s233_s26 = smul.f32 %s270_s25, %s224_s24 }
 0x271   :  { %235 = sst [smem:[#allocation9]] %s233_s26 }
 0x272   :  { %244 = dma.smem_to_hbm %s387_s27, 16, %s242_s22, [#allocation5]  }
 0x273   :  { %379 = dma.done.wait [#allocation5], 16  }
 0x274   :  { %380 = vsyncadd [#allocation5], 4294967280 }
 0x275   :  { %249 = sfence }
 0x276   :  { %250 = vsyncpa [#allocation4], 1 }
 0x277   :  { %251 = vsyncpa [#allocation7], 1 }
 0x278   :  { %252 = vsyncpa [#allocation5], 1 }

</bundles_post_ra>
